<compile_context>
chip_gen: v6e
topology: v6e:2x2x1
jax: 0.10.0
libtpu: 0.0.40
codegen_flags: <defaults>
</compile_context>

<pallas_src>
import functools

import jax
import jax.numpy as jnp
from jax import lax
from jax.experimental import pallas as pl
from jax.experimental.pallas import tpu as pltpu


# ----------------------------------------------------------------------------
# Pallas kernel
# ----------------------------------------------------------------------------
def _dwconv3x3_kernel(x_ref, top_ref, bot_ref, wl_ref, wc_ref, wr_ref, b_ref,
                      o_ref, *, w_axis):
    """One (batch, channel-block, row-block) tile of a 3x3 stride-1 depthwise
    conv with a folded BatchNorm.

    The kernel sees a (TH, S, L) tile view (S = sublanes, L = lanes).  The
    image width W lies on axis `w_axis` (1 -> sublanes, 2 -> lanes); channels
    lie on the other minor axis.  The kx = 0/2 taps are produced by pltpu.roll
    of the already-loaded slab (XLU slot, no extra VMEM reads); the
    out-of-image boundary columns are zeroed via masks that the wrapper folded
    into wl/wr.

    x_ref            : (1, TH, S, L)  main row block (compute dtype)
    top_ref, bot_ref : (1, 1,  S, L)  rows just above / below the block
    wl/wc/wr_ref     : (3, *, *) f32  per-ky weights for the left/center/right
                                      taps, broadcastable against (TH, S, L)
    b_ref            : (*, *)   f32   BN-folded per-channel bias, broadcastable
    o_ref            : (1, TH, S, L)  output block
    """
    h = pl.program_id(2)
    nh = pl.num_programs(2)
    f32 = jnp.float32

    # Single upcast per input element (perf review: no per-tap casts).
    x = x_ref[0].astype(f32)                            # (TH, S, L)
    # Rows outside the image are the conv's zero padding; the halo BlockSpecs
    # clamp the row index at the image edges, so gate them to zero here.
    top = top_ref[0].astype(f32) * (h > 0).astype(f32)
    bot = bot_ref[0].astype(f32) * (h < nh - 1).astype(f32)

    th = x.shape[0]
    if th > 1:
        # Row slabs for ky = 0 / 2: cheap concatenation along the leading
        # (non-layout) axis of values already in registers / VMEM.
        prev_rows = jnp.concatenate([top, x[:th - 1]], axis=0)   # rows r-1
        next_rows = jnp.concatenate([x[1:], bot], axis=0)        # rows r+1
    else:
        prev_rows, next_rows = top, bot

    w_size = x.shape[w_axis]

    def row_contrib(slab, ky):
        # slab[.., w-1] / slab[.., w+1] via XLU rotations of the single slab
        # load.  pltpu.roll follows jnp.roll semantics; shift = w_size-1 is the
        # non-negative equivalent of shift = -1.  Wrapped-around boundary
        # columns are killed by the masks folded into wl/wr.
        left = pltpu.roll(slab, 1, w_axis)
        right = pltpu.roll(slab, w_size - 1, w_axis)
        return left * wl_ref[ky] + slab * wc_ref[ky] + right * wr_ref[ky]

    acc = (row_contrib(prev_rows, 0)
           + row_contrib(x, 1)
           + row_contrib(next_rows, 2))
    o_ref[0] = (acc + b_ref[...]).astype(o_ref.dtype)


# ----------------------------------------------------------------------------
# Wrapper helpers
# ----------------------------------------------------------------------------
def _round_up(x, m):
    return (x + m - 1) // m * m


def _vmem_capacity_bytes():
    try:
        return int(pltpu.get_tpu_info().vmem_capacity_bytes)
    except Exception:
        return 64 << 20          # conservative fallback (v7x per-TC VMEM)


def _choose_tile_h(H, bytes_per_row, fixed_bytes, budget_bytes):
    """Pick the row-block height TH and the (possibly padded) height Hp.

    Largest TH whose working set fits the budget; prefer a nearby divisor of H
    (no padding); otherwise pad H with zero rows (perf review: never degrade to
    the pathological TH=1 divisor fallback).
    """
    avail = max(budget_bytes - fixed_bytes, bytes_per_row)
    th_cap = int(max(1, min(H, avail // bytes_per_row)))
    if H % th_cap == 0:
        return th_cap, H
    for th in range(th_cap, max(th_cap // 2, 1) - 1, -1):
        if H % th == 0:
            return th, H
    return th_cap, _round_up(H, th_cap)


def _fold_bn(conv_w, gamma, beta, mean, var, eps):
    """Fold inference-mode BatchNorm into depthwise weight (3,3,C) and bias."""
    scale = gamma / jnp.sqrt(var + eps)                                    # (C,)
    w_hwc = jnp.transpose(conv_w[:, 0] * scale[:, None, None], (1, 2, 0))  # (3,3,C)
    bias = beta - mean * scale                                             # (C,)
    return w_hwc.astype(jnp.float32), bias.astype(jnp.float32)


# ----------------------------------------------------------------------------
# Forward pass
# ----------------------------------------------------------------------------
def _forward_impl(x, data_format, conv_w, bn_gamma, bn_beta, bn_mean, bn_var,
                  eps, compute_dtype):
    if data_format == "NCHW":
        N, C, H, W = x.shape
    else:  # "NHWC"
        N, H, W, C = x.shape
    if conv_w.shape != (C, 1, 3, 3):
        # TODO(synk): only kernel_size=3 (padding=1), stride=1, groups=C is
        # implemented; kernel_size=1 / stride>1 module variants are not.
        raise NotImplementedError("only 3x3 stride-1 depthwise conv supported")

    out_dtype = x.dtype
    cdt = out_dtype if compute_dtype is None else jnp.dtype(compute_dtype)
    in_isz = jnp.dtype(cdt).itemsize
    out_isz = jnp.dtype(out_dtype).itemsize
    f32 = jnp.float32

    w_hwc, bias = _fold_bn(conv_w, bn_gamma, bn_beta, bn_mean, bn_var, eps)

    # Layout choice (perf review "small-C path"): narrow-channel layers do NOT
    # pad C up to 128 lanes; W goes on lanes and C on sublanes instead.
    channels_on_lanes = C > 64
    if channels_on_lanes:
        # Layout A: (N, H, W, C) -- W on sublanes (padded to 8k), C on lanes
        # (padded to 128k, tiled by 128).
        perm = (0, 2, 3, 1) if data_format == "NCHW" else None
        inv_perm = (0, 3, 1, 2) if data_format == "NCHW" else None
        S_pad, L_pad = _round_up(W, 8), _round_up(C, 128)
        l_block, n_cblk, w_axis = 128, L_pad // 128, 1
        mask_l = (jnp.arange(S_pad) > 0).astype(f32)
        mask_r = (jnp.arange(S_pad) < (W - 1)).astype(f32)
        w_pad = jnp.pad(w_hwc, ((0, 0), (0, 0), (0, L_pad - C)))     # (3,3,Cp)
        wl = w_pad[:, 0, :][:, None, :] * mask_l[None, :, None]      # (3,Wp,Cp)
        wc = w_pad[:, 1, :][:, None, :]                              # (3,1, Cp)
        wr = w_pad[:, 2, :][:, None, :] * mask_r[None, :, None]      # (3,Wp,Cp)
        b2 = jnp.pad(bias, (0, L_pad - C)).reshape(1, L_pad)         # (1, Cp)
        s_valid, l_valid = W, C
    else:
        # Layout B: (N, H, C, W) -- C on sublanes (padded to 8k), W on lanes
        # (padded to 128k, untiled).
        perm = (0, 2, 1, 3) if data_format == "NCHW" else (0, 1, 3, 2)
        inv_perm = perm                                    # both self-inverse
        S_pad, L_pad = _round_up(C, 8), _round_up(W, 128)
        l_block, n_cblk, w_axis = L_pad, 1, 2
        mask_l = (jnp.arange(L_pad) > 0).astype(f32)
        mask_r = (jnp.arange(L_pad) < (W - 1)).astype(f32)
        w_pad = jnp.pad(w_hwc, ((0, 0), (0, 0), (0, S_pad - C)))     # (3,3,Cs)
        wl = w_pad[:, 0, :, None] * mask_l[None, None, :]            # (3,Cs,Wp)
        wc = jnp.broadcast_to(w_pad[:, 1, :, None], (3, S_pad, L_pad))
        wr = w_pad[:, 2, :, None] * mask_r[None, None, :]
        b2 = jnp.broadcast_to(jnp.pad(bias, (0, S_pad - C))[:, None],
                              (S_pad, L_pad))
        s_valid, l_valid = C, W

    # ---- VMEM-aware row tiling; TH budget and vmem_limit use the same model.
    vmem_cap = _vmem_capacity_bytes()
    tile_sl = S_pad * l_block
    # 2x-buffered input + output, ~5 f32 tile-sized intermediates in-kernel.
    bytes_per_row = tile_sl * (2 * in_isz + 2 * out_isz + 20)
    w_block_bytes = 4 * l_block * (3 * wl.shape[1] + 3 * wc.shape[1]
                                   + 3 * wr.shape[1] + b2.shape[0])
    fixed = 4 * tile_sl * in_isz + 2 * w_block_bytes + (2 << 20)
    budget = int(vmem_cap * 0.6)
    TH, Hp = _choose_tile_h(H, bytes_per_row, fixed, budget)
    nH = Hp // TH
    need = fixed + TH * bytes_per_row
    vmem_limit = max(32 << 20,
                     min(int(need * 1.25) + (4 << 20), int(vmem_cap * 0.85)))

    # ---- lay out (transpose/cast/pad fuse into one XLA pass) ---------------
    x_lay = x if perm is None else jnp.transpose(x, perm)
    x_lay = x_lay.astype(cdt)
    pads = ((0, 0), (0, Hp - H), (0, S_pad - x_lay.shape[2]),
            (0, L_pad - x_lay.shape[3]))
    if any(p[1] for p in pads):
        x_lay = jnp.pad(x_lay, pads)      # zero rows/cols == the conv padding

    grid_spec = pltpu.PrefetchScalarGridSpec(
        num_scalar_prefetch=0,
        grid=(N, n_cblk, nH),
        in_specs=[
            # main row block
            pl.BlockSpec((1, TH, S_pad, l_block),
                         lambda n, c, h: (n, h, 0, c)),
            # 1-row halo above (block height 1 => block index == row index),
            # clamped at the top edge and gated to zero in-kernel.
            pl.BlockSpec((1, 1, S_pad, l_block),
                         lambda n, c, h: (n, jnp.maximum(h * TH - 1, 0), 0, c)),
            # 1-row halo below, clamped at the bottom edge.
            pl.BlockSpec((1, 1, S_pad, l_block),
                         lambda n, c, h: (n, jnp.minimum(h * TH + TH, Hp - 1),
                                          0, c)),
            # pre-masked left / center / right tap weights + BN-folded bias
            pl.BlockSpec((3, wl.shape[1], l_block), lambda n, c, h: (0, 0, c)),
            pl.BlockSpec((3, wc.shape[1], l_block), lambda n, c, h: (0, 0, c)),
            pl.BlockSpec((3, wr.shape[1], l_block), lambda n, c, h: (0, 0, c)),
            pl.BlockSpec((b2.shape[0], l_block), lambda n, c, h: (0, c)),
        ],
        out_specs=pl.BlockSpec((1, TH, S_pad, l_block),
                               lambda n, c, h: (n, h, 0, c)),
    )

    out_padded = pl.pallas_call(
        functools.partial(_dwconv3x3_kernel, w_axis=w_axis),
        out_shape=jax.ShapeDtypeStruct((N, Hp, S_pad, L_pad), out_dtype),
        grid_spec=grid_spec,
        compiler_params=pltpu.CompilerParams(
            # TODO(synk): for v7x megacore at tiny N, reorder/flatten the grid
            # so the sharded axis has an even extent.
            dimension_semantics=("parallel", "parallel", "parallel"),
            vmem_limit_bytes=vmem_limit),
        # TODO(synk): the two 1-row halo inputs could be folded into a single
        # overlapping (TH+2)-row block via pl.Element indexing, dropping two
        # small DMA channels per grid step.
    )(x_lay, x_lay, x_lay, wl, wc, wr, b2)

    out = out_padded[:, :H, :s_valid, :l_valid]
    if inv_perm is not None:
        out = jnp.transpose(out, inv_perm)
    return out


@functools.partial(jax.jit, static_argnames=("compute_dtype",))
def depthwise_conv_forward(x_nchw, params, *, eps=1e-5, compute_dtype=None):
    """DepthWiseConv.forward: (N, C, H, W) -> (N, C, H, W), inference-mode BN.

    compute_dtype=jnp.bfloat16 halves HBM/VMEM input bytes on every generation
    (accumulation stays f32 in-kernel); use looser tolerances when enabled.
    """
    return _forward_impl(x_nchw, "NCHW", params["conv_w"], params["bn_gamma"],
                         params["bn_beta"], params["bn_mean"],
                         params["bn_var"], eps, compute_dtype)


@functools.partial(jax.jit, static_argnames=("compute_dtype",))
def depthwise_conv_forward_nhwc(x_nhwc, params, *, eps=1e-5, compute_dtype=None):
    """Channels-last entry point (perf review: NHWC fast path as a real API).

    Chained channels-last ops skip the NCHW<->NHWC round trip entirely; for
    C > 64 no input transpose is performed at all."""
    return _forward_impl(x_nhwc, "NHWC", params["conv_w"], params["bn_gamma"],
                         params["bn_beta"], params["bn_mean"],
                         params["bn_var"], eps, compute_dtype)


# ----------------------------------------------------------------------------
# Pure-JAX reference & synthetic parameters
# ----------------------------------------------------------------------------
def _reference_forward(x_nchw, params, eps=1e-5):
    w = params["conv_w"]                       # (C, 1, 3, 3)
    C = w.shape[0]
    dn = lax.conv_dimension_numbers(x_nchw.shape, w.shape,
                                    ("NCHW", "OIHW", "NCHW"))
    y = lax.conv_general_dilated(x_nchw, w, window_strides=(1, 1),
                                 padding=[(1, 1), (1, 1)],
                                 dimension_numbers=dn, feature_group_count=C)
    scale = params["bn_gamma"] / jnp.sqrt(params["bn_var"] + eps)
    bias = params["bn_beta"] - params["bn_mean"] * scale
    return y * scale[None, :, None, None] + bias[None, :, None, None]


def init_params(key, c):
    """Synthetic parameters matching DepthWiseConv(inc=c, kernel_size=3)."""
    ks = jax.random.split(key, 5)
    return {
        # nn.Conv2d(c, c, 3, stride=1, padding=1, groups=c, bias=False)
        "conv_w": jax.random.normal(ks[0], (c, 1, 3, 3), jnp.float32) * 0.3,
        # nn.BatchNorm2d(c) running stats / affine params (inference mode)
        "bn_gamma": 1.0 + 0.1 * jax.random.normal(ks[1], (c,), jnp.float32),
        "bn_beta": 0.1 * jax.random.normal(ks[2], (c,), jnp.float32),
        "bn_mean": 0.05 * jax.random.normal(ks[3], (c,), jnp.float32),
        "bn_var": jnp.abs(jax.random.normal(ks[4], (c,), jnp.float32)) + 0.5,
    }
    # TODO(synk): training-mode BatchNorm (batch statistics + running-stat
    # updates) is not implemented; BN is folded in inference mode only.


if __name__ == "__main__":
    key = jax.random.PRNGKey(0)

    cases = [
        # Small-C layer -> channels-on-sublanes / W-on-lanes path.
        (2, 4, 16, 16),
        # Wide-C layer -> channels-on-lanes path (2 channel blocks, W padded).
        (1, 160, 8, 12),
    ]
    for i, (N, C, H, W) in enumerate(cases):
        key, k_x, k_p = jax.random.split(key, 3)
        x = jax.random.normal(k_x, (N, C, H, W), jnp.float32)
        params = init_params(k_p, C)

        out = jax.block_until_ready(depthwise_conv_forward(x, params))
        ref = _reference_forward(x, params)
        assert out.shape == (N, C, H, W) and out.dtype == x.dtype
        max_err = float(jnp.max(jnp.abs(out - ref)))
        assert jnp.allclose(out, ref, atol=1e-4, rtol=1e-4), (i, max_err)

    # Channels-last entry point (small-C case).
    N, C, H, W = cases[0]
    key, k_x, k_p = jax.random.split(key, 3)
    x = jax.random.normal(k_x, (N, C, H, W), jnp.float32)
    params = init_params(k_p, C)
    x_nhwc = jnp.transpose(x, (0, 2, 3, 1))
    out_nhwc = jax.block_until_ready(depthwise_conv_forward_nhwc(x_nhwc, params))
    ref_nhwc = jnp.transpose(_reference_forward(x, params), (0, 2, 3, 1))
    max_err = float(jnp.max(jnp.abs(out_nhwc - ref_nhwc)))
    assert jnp.allclose(out_nhwc, ref_nhwc, atol=1e-4, rtol=1e-4), max_err

    print("KERNEL_OK")
</pallas_src>

<mosaic_0001>
module attributes {stable_mosaic.version = 11 : i64} {
  func.func @_dwconv3x3_kernel(%arg0: i32, %arg1: i32, %arg2: i32, %arg3: memref<1x16x8x128xf32, #tpu.memory_space<vmem>>, %arg4: memref<1x1x8x128xf32, #tpu.memory_space<vmem>>, %arg5: memref<1x1x8x128xf32, #tpu.memory_space<vmem>>, %arg6: memref<3x8x128xf32, #tpu.memory_space<vmem>>, %arg7: memref<3x8x128xf32, #tpu.memory_space<vmem>>, %arg8: memref<3x8x128xf32, #tpu.memory_space<vmem>>, %arg9: memref<8x128xf32, #tpu.memory_space<vmem>>, %arg10: memref<1x16x8x128xf32, #tpu.memory_space<vmem>>) attributes {dimension_semantics = [#tpu.dimension_semantics<parallel>, #tpu.dimension_semantics<parallel>, #tpu.dimension_semantics<parallel>], iteration_bounds = array<i64: 2, 1, 1>, scalar_prefetch = 0 : i64, scratch_operands = 0 : i64, tpu.core_type = #tpu.core_type<tc>, window_params = [{transform_indices = @transform_0, window_bounds = array<i64: 1, 16, 8, 128>}, {transform_indices = @transform_1, window_bounds = array<i64: 1, 1, 8, 128>}, {transform_indices = @transform_2, window_bounds = array<i64: 1, 1, 8, 128>}, {transform_indices = @transform_3, window_bounds = array<i64: 3, 8, 128>}, {transform_indices = @transform_4, window_bounds = array<i64: 3, 8, 128>}, {transform_indices = @transform_5, window_bounds = array<i64: 3, 8, 128>}, {transform_indices = @transform_6, window_bounds = array<i64: 8, 128>}, {transform_indices = @transform_7, window_bounds = array<i64: 1, 16, 8, 128>}]} {
    %c0 = arith.constant 0 : index
    %c0_0 = arith.constant 0 : index
    %c0_1 = arith.constant 0 : index
    %c0_2 = arith.constant 0 : index
    %0 = vector.load %arg3[%c0, %c0_0, %c0_1, %c0_2] : memref<1x16x8x128xf32, #tpu.memory_space<vmem>>, vector<1x16x8x128xf32>
    %1 = vector.shape_cast %0 : vector<1x16x8x128xf32> to vector<16x8x128xf32>
    %c0_3 = arith.constant 0 : index
    %c0_4 = arith.constant 0 : index
    %c0_5 = arith.constant 0 : index
    %c0_6 = arith.constant 0 : index
    %2 = vector.load %arg4[%c0_3, %c0_4, %c0_5, %c0_6] : memref<1x1x8x128xf32, #tpu.memory_space<vmem>>, vector<1x1x8x128xf32>
    %3 = vector.shape_cast %2 : vector<1x1x8x128xf32> to vector<1x8x128xf32>
    %c0_i32 = arith.constant 0 : i32
    %4 = arith.cmpi sgt, %arg2, %c0_i32 : i32
    %5 = arith.extui %4 : i1 to i32
    %6 = arith.sitofp %5 : i32 to f32
    %7 = vector.broadcast %6 : f32 to vector<1x8x128xf32>
    %8 = arith.mulf %3, %7 : vector<1x8x128xf32>
    %c0_7 = arith.constant 0 : index
    %c0_8 = arith.constant 0 : index
    %c0_9 = arith.constant 0 : index
    %c0_10 = arith.constant 0 : index
    %9 = vector.load %arg5[%c0_7, %c0_8, %c0_9, %c0_10] : memref<1x1x8x128xf32, #tpu.memory_space<vmem>>, vector<1x1x8x128xf32>
    %10 = vector.shape_cast %9 : vector<1x1x8x128xf32> to vector<1x8x128xf32>
    %c0_i32_11 = arith.constant 0 : i32
    %11 = arith.cmpi slt, %arg2, %c0_i32_11 : i32
    %12 = arith.extui %11 : i1 to i32
    %13 = arith.sitofp %12 : i32 to f32
    %14 = vector.broadcast %13 : f32 to vector<1x8x128xf32>
    %15 = arith.mulf %10, %14 : vector<1x8x128xf32>
    %16 = vector.extract_strided_slice %1 {offsets = [0, 0, 0], sizes = [15, 8, 128], strides = [1, 1, 1]} : vector<16x8x128xf32> to vector<15x8x128xf32>
    %17 = tpu.concatenate %8, %16 in 0 : vector<1x8x128xf32>, vector<15x8x128xf32> -> vector<16x8x128xf32>
    %18 = vector.extract_strided_slice %1 {offsets = [1, 0, 0], sizes = [15, 8, 128], strides = [1, 1, 1]} : vector<16x8x128xf32> to vector<15x8x128xf32>
    %19 = tpu.concatenate %18, %15 in 0 : vector<15x8x128xf32>, vector<1x8x128xf32> -> vector<16x8x128xf32>
    %c1_i32 = arith.constant 1 : i32
    %20 = tpu.dynamic_rotate %17 by %c1_i32 dim 2 : vector<16x8x128xf32>, i32 -> vector<16x8x128xf32>
    %c127_i32 = arith.constant 127 : i32
    %21 = tpu.dynamic_rotate %17 by %c127_i32 dim 2 : vector<16x8x128xf32>, i32 -> vector<16x8x128xf32>
    %c0_12 = arith.constant 0 : index
    %c0_13 = arith.constant 0 : index
    %c0_14 = arith.constant 0 : index
    %22 = vector.load %arg6[%c0_12, %c0_13, %c0_14] : memref<3x8x128xf32, #tpu.memory_space<vmem>>, vector<1x8x128xf32>
    %23 = vector.shape_cast %22 : vector<1x8x128xf32> to vector<8x128xf32>
    %24 = vector.shape_cast %23 : vector<8x128xf32> to vector<1x8x128xf32>
    %25 = vector.broadcast %24 : vector<1x8x128xf32> to vector<16x8x128xf32>
    %26 = arith.mulf %20, %25 : vector<16x8x128xf32>
    %c0_15 = arith.constant 0 : index
    %c0_16 = arith.constant 0 : index
    %c0_17 = arith.constant 0 : index
    %27 = vector.load %arg7[%c0_15, %c0_16, %c0_17] : memref<3x8x128xf32, #tpu.memory_space<vmem>>, vector<1x8x128xf32>
    %28 = vector.shape_cast %27 : vector<1x8x128xf32> to vector<8x128xf32>
    %29 = vector.shape_cast %28 : vector<8x128xf32> to vector<1x8x128xf32>
    %30 = vector.broadcast %29 : vector<1x8x128xf32> to vector<16x8x128xf32>
    %31 = arith.mulf %17, %30 : vector<16x8x128xf32>
    %32 = arith.addf %26, %31 : vector<16x8x128xf32>
    %c0_18 = arith.constant 0 : index
    %c0_19 = arith.constant 0 : index
    %c0_20 = arith.constant 0 : index
    %33 = vector.load %arg8[%c0_18, %c0_19, %c0_20] : memref<3x8x128xf32, #tpu.memory_space<vmem>>, vector<1x8x128xf32>
    %34 = vector.shape_cast %33 : vector<1x8x128xf32> to vector<8x128xf32>
    %35 = vector.shape_cast %34 : vector<8x128xf32> to vector<1x8x128xf32>
    %36 = vector.broadcast %35 : vector<1x8x128xf32> to vector<16x8x128xf32>
    %37 = arith.mulf %21, %36 : vector<16x8x128xf32>
    %38 = arith.addf %32, %37 : vector<16x8x128xf32>
    %c1_i32_21 = arith.constant 1 : i32
    %39 = tpu.dynamic_rotate %1 by %c1_i32_21 dim 2 : vector<16x8x128xf32>, i32 -> vector<16x8x128xf32>
    %c127_i32_22 = arith.constant 127 : i32
    %40 = tpu.dynamic_rotate %1 by %c127_i32_22 dim 2 : vector<16x8x128xf32>, i32 -> vector<16x8x128xf32>
    %c1 = arith.constant 1 : index
    %c0_23 = arith.constant 0 : index
    %c0_24 = arith.constant 0 : index
    %41 = vector.load %arg6[%c1, %c0_23, %c0_24] : memref<3x8x128xf32, #tpu.memory_space<vmem>>, vector<1x8x128xf32>
    %42 = vector.shape_cast %41 : vector<1x8x128xf32> to vector<8x128xf32>
    %43 = vector.shape_cast %42 : vector<8x128xf32> to vector<1x8x128xf32>
    %44 = vector.broadcast %43 : vector<1x8x128xf32> to vector<16x8x128xf32>
    %45 = arith.mulf %39, %44 : vector<16x8x128xf32>
    %c1_25 = arith.constant 1 : index
    %c0_26 = arith.constant 0 : index
    %c0_27 = arith.constant 0 : index
    %46 = vector.load %arg7[%c1_25, %c0_26, %c0_27] : memref<3x8x128xf32, #tpu.memory_space<vmem>>, vector<1x8x128xf32>
    %47 = vector.shape_cast %46 : vector<1x8x128xf32> to vector<8x128xf32>
    %48 = vector.shape_cast %47 : vector<8x128xf32> to vector<1x8x128xf32>
    %49 = vector.broadcast %48 : vector<1x8x128xf32> to vector<16x8x128xf32>
    %50 = arith.mulf %1, %49 : vector<16x8x128xf32>
    %51 = arith.addf %45, %50 : vector<16x8x128xf32>
    %c1_28 = arith.constant 1 : index
    %c0_29 = arith.constant 0 : index
    %c0_30 = arith.constant 0 : index
    %52 = vector.load %arg8[%c1_28, %c0_29, %c0_30] : memref<3x8x128xf32, #tpu.memory_space<vmem>>, vector<1x8x128xf32>
    %53 = vector.shape_cast %52 : vector<1x8x128xf32> to vector<8x128xf32>
    %54 = vector.shape_cast %53 : vector<8x128xf32> to vector<1x8x128xf32>
    %55 = vector.broadcast %54 : vector<1x8x128xf32> to vector<16x8x128xf32>
    %56 = arith.mulf %40, %55 : vector<16x8x128xf32>
    %57 = arith.addf %51, %56 : vector<16x8x128xf32>
    %58 = arith.addf %38, %57 : vector<16x8x128xf32>
    %c1_i32_31 = arith.constant 1 : i32
    %59 = tpu.dynamic_rotate %19 by %c1_i32_31 dim 2 : vector<16x8x128xf32>, i32 -> vector<16x8x128xf32>
    %c127_i32_32 = arith.constant 127 : i32
    %60 = tpu.dynamic_rotate %19 by %c127_i32_32 dim 2 : vector<16x8x128xf32>, i32 -> vector<16x8x128xf32>
    %c2 = arith.constant 2 : index
    %c0_33 = arith.constant 0 : index
    %c0_34 = arith.constant 0 : index
    %61 = vector.load %arg6[%c2, %c0_33, %c0_34] : memref<3x8x128xf32, #tpu.memory_space<vmem>>, vector<1x8x128xf32>
    %62 = vector.shape_cast %61 : vector<1x8x128xf32> to vector<8x128xf32>
    %63 = vector.shape_cast %62 : vector<8x128xf32> to vector<1x8x128xf32>
    %64 = vector.broadcast %63 : vector<1x8x128xf32> to vector<16x8x128xf32>
    %65 = arith.mulf %59, %64 : vector<16x8x128xf32>
    %c2_35 = arith.constant 2 : index
    %c0_36 = arith.constant 0 : index
    %c0_37 = arith.constant 0 : index
    %66 = vector.load %arg7[%c2_35, %c0_36, %c0_37] : memref<3x8x128xf32, #tpu.memory_space<vmem>>, vector<1x8x128xf32>
    %67 = vector.shape_cast %66 : vector<1x8x128xf32> to vector<8x128xf32>
    %68 = vector.shape_cast %67 : vector<8x128xf32> to vector<1x8x128xf32>
    %69 = vector.broadcast %68 : vector<1x8x128xf32> to vector<16x8x128xf32>
    %70 = arith.mulf %19, %69 : vector<16x8x128xf32>
    %71 = arith.addf %65, %70 : vector<16x8x128xf32>
    %c2_38 = arith.constant 2 : index
    %c0_39 = arith.constant 0 : index
    %c0_40 = arith.constant 0 : index
    %72 = vector.load %arg8[%c2_38, %c0_39, %c0_40] : memref<3x8x128xf32, #tpu.memory_space<vmem>>, vector<1x8x128xf32>
    %73 = vector.shape_cast %72 : vector<1x8x128xf32> to vector<8x128xf32>
    %74 = vector.shape_cast %73 : vector<8x128xf32> to vector<1x8x128xf32>
    %75 = vector.broadcast %74 : vector<1x8x128xf32> to vector<16x8x128xf32>
    %76 = arith.mulf %60, %75 : vector<16x8x128xf32>
    %77 = arith.addf %71, %76 : vector<16x8x128xf32>
    %78 = arith.addf %58, %77 : vector<16x8x128xf32>
    %c0_41 = arith.constant 0 : index
    %c0_42 = arith.constant 0 : index
    %79 = vector.load %arg9[%c0_41, %c0_42] : memref<8x128xf32, #tpu.memory_space<vmem>>, vector<8x128xf32>
    %80 = vector.shape_cast %79 : vector<8x128xf32> to vector<1x8x128xf32>
    %81 = vector.broadcast %80 : vector<1x8x128xf32> to vector<16x8x128xf32>
    %82 = arith.addf %78, %81 : vector<16x8x128xf32>
    %c0_43 = arith.constant 0 : index
    %c0_44 = arith.constant 0 : index
    %c0_45 = arith.constant 0 : index
    %c0_46 = arith.constant 0 : index
    %83 = vector.load %arg10[%c0_43, %c0_44, %c0_45, %c0_46] : memref<1x16x8x128xf32, #tpu.memory_space<vmem>>, vector<1x16x8x128xf32>
    %84 = vector.shape_cast %83 : vector<1x16x8x128xf32> to vector<16x8x128xf32>
    %85 = vector.shape_cast %82 : vector<16x8x128xf32> to vector<1x16x8x128xf32>
    tpu.vector_store %arg10[%c0_43, %c0_44, %c0_45, %c0_46], %85 {strides = array<i32>} : memref<1x16x8x128xf32, #tpu.memory_space<vmem>>, vector<1x16x8x128xf32>,
    return
  }
  func.func @transform_0(%arg0: i32, %arg1: i32, %arg2: i32) -> (i32, i32, i32, i32) {
    %c0_i32 = arith.constant 0 : i32
    %c0_i32_0 = arith.constant 0 : i32
    return %arg0, %arg2, %c0_i32, %arg1 : i32, i32, i32, i32
  }
  func.func @transform_1(%arg0: i32, %arg1: i32, %arg2: i32) -> (i32, i32, i32, i32) {
    %c16_i32 = arith.constant 16 : i32
    %0 = arith.muli %arg2, %c16_i32 : i32
    %c1_i32 = arith.constant 1 : i32
    %1 = arith.subi %0, %c1_i32 : i32
    %c0_i32 = arith.constant 0 : i32
    %2 = arith.maxsi %1, %c0_i32 : i32
    %c0_i32_0 = arith.constant 0 : i32
    %c0_i32_1 = arith.constant 0 : i32
    return %arg0, %2, %c0_i32_0, %arg1 : i32, i32, i32, i32
  }
  func.func @transform_2(%arg0: i32, %arg1: i32, %arg2: i32) -> (i32, i32, i32, i32) {
    %c16_i32 = arith.constant 16 : i32
    %0 = arith.muli %arg2, %c16_i32 : i32
    %c16_i32_0 = arith.constant 16 : i32
    %1 = arith.addi %0, %c16_i32_0 : i32
    %c15_i32 = arith.constant 15 : i32
    %2 = arith.minsi %1, %c15_i32 : i32
    %c0_i32 = arith.constant 0 : i32
    %c0_i32_1 = arith.constant 0 : i32
    return %arg0, %2, %c0_i32, %arg1 : i32, i32, i32, i32
  }
  func.func @transform_3(%arg0: i32, %arg1: i32, %arg2: i32) -> (i32, i32, i32) {
    %c0_i32 = arith.constant 0 : i32
    %c0_i32_0 = arith.constant 0 : i32
    %c0_i32_1 = arith.constant 0 : i32
    return %c0_i32, %c0_i32_0, %arg1 : i32, i32, i32
  }
  func.func @transform_4(%arg0: i32, %arg1: i32, %arg2: i32) -> (i32, i32, i32) {
    %c0_i32 = arith.constant 0 : i32
    %c0_i32_0 = arith.constant 0 : i32
    %c0_i32_1 = arith.constant 0 : i32
    return %c0_i32, %c0_i32_0, %arg1 : i32, i32, i32
  }
  func.func @transform_5(%arg0: i32, %arg1: i32, %arg2: i32) -> (i32, i32, i32) {
    %c0_i32 = arith.constant 0 : i32
    %c0_i32_0 = arith.constant 0 : i32
    %c0_i32_1 = arith.constant 0 : i32
    return %c0_i32, %c0_i32_0, %arg1 : i32, i32, i32
  }
  func.func @transform_6(%arg0: i32, %arg1: i32, %arg2: i32) -> (i32, i32) {
    %c0_i32 = arith.constant 0 : i32
    %c0_i32_0 = arith.constant 0 : i32
    return %c0_i32, %arg1 : i32, i32
  }
  func.func @transform_7(%arg0: i32, %arg1: i32, %arg2: i32) -> (i32, i32, i32, i32) {
    %c0_i32 = arith.constant 0 : i32
    %c0_i32_0 = arith.constant 0 : i32
    return %arg0, %arg2, %c0_i32, %arg1 : i32, i32, i32, i32
  }
}

</mosaic_0001>

<bundles_post_ra>
// kernel: depthwise_conv_forward.1
= control target key start
LH: loop header
LB: loop body
LE: loop exit
PB: predicated region body
PF: predicated region fallthrough
CT: control target
= control target key end

     0   :  { %s1300_s24 = smov 0   ;;  %s1302_s25 = smov 0   ;;  %s2001_s0 = inlined_call_operand.vmem [shape: f32[2,16,8,128], index: 0, kind: input, shape index: {}, may-alias: {0,1,2}]   ;;  %s2002_s1 = inlined_call_operand.vmem [shape: f32[2,16,8,128], index: 1, kind: input, shape index: {}, may-alias: {0,1,2}]   ;;  %s2003_s2 = inlined_call_operand.vmem [shape: f32[2,16,8,128], index: 2, kind: input, shape index: {}, may-alias: {0,1,2}]   ;;  %s2004_s3 = inlined_call_operand.vmem [shape: f32[3,8,128], index: 3, kind: input, shape index: {}]   ;;  %s2005_s4 = inlined_call_operand.vmem [shape: f32[3,8,128], index: 4, kind: input, shape index: {}]   ;;  %s2006_s5 = inlined_call_operand.vmem [shape: f32[3,8,128], index: 5, kind: input, shape index: {}]   ;;  %s2007_s6 = inlined_call_operand.vmem [shape: f32[8,128], index: 6, kind: input, shape index: {}]   ;;  %s2008_s7 = inlined_call_operand.vmem [shape: f32[2,16,8,128], index: 7, kind: output, shape index: {}]  }
   0x1   :  { %s1304_s26 = smov 0  }
   0x2 LB: > { %s36_s27 = sadd.s32 1, %s1252_s25  ;;  %p1185_p0 = scmp.ge.s32.totalorder %s1256_s26, 1  ;;  %s1256_s26 = sphi %s1304_s26, %s17_s26   ;;  %s1252_s25 = sphi %s1302_s25, %s2046_s25   ;;  %s1248_s24 = sphi %s1300_s24, %s2045_s24  }
   0x3   : > { %p38_p1 = scmp.ge.s32.totalorder %s36_s27, 2  ;;  %p380_p2 = scmp.lt.s32.totalorder %s1256_s26, 3 }
   0x5   : > { %s2048_s27 = smov (%p38_p1, %s36_s27), 0  ;;  %p381_p3 = pnand %p1185_p0, %p380_p2 }
   0x7   : > { %384 = sbr.rel (%p381_p3) target bundleno = 213 (0xd5), region = 48 }
   0xc   : > { %p473_p4 = scmp.lt.s32.totalorder %s1248_s24, 1  ;;  %s1258_s12 = smov 1   ;;  %v1443_v20 = vld [vmem:[%s2005_s4 + $0x10] sm:$0xff]  ;;  %v661_v23 = vld [vmem:[%s2005_s4] sm:$0xff]  ;;  %v1451_v24 = vld [vmem:[%s2005_s4 + $0x8] sm:$0xff] }
   0xd   : > { %s1259_s13 = smov 127   ;;  %v1570_v60 = vld [vmem:[%s2004_s3 + $0x10] sm:$0xff] }
   0xe   : > { %s2050_s24 = smov (!%p473_p4, %s1248_s24), 1 }
   0xf   : > { %s1318_s28 = sshll.u32 %s2050_s24, 7 }
  0x10   : > { %s1324_s8 = scalar_lea.vmem %s2001_s0, %s1318_s28  ;;  %s499_s11 = scalar_lea.vmem %s2002_s1, %s1318_s28 }
  0x11   : > { %v1331_v0 = vld [vmem:[%s1324_s8 + $0x8] sm:$0xff]  ;;  %v1334_v1 = vld [vmem:[%s1324_s8] sm:$0xff]  ;;  %v1341_v2 = vld [vmem:[%s1324_s8 + $0x10] sm:$0xff]  ;;  %s1205_s14 = sadd.s32 120, %s1318_s28  ;;  %s1883_s21 = scalar_lea.vmem %s2008_s7, %s1318_s28 }
  0x12   : > { %584 = vrot.lane.b32.xlu1 %v1331_v0, %s1258_s12  ;;  %582 = vrot.lane.b32.xlu0 %v1334_v1, %s1258_s12  ;;  %v1344_v3 = vld [vmem:[%s1324_s8 + $0x18] sm:$0xff]  ;;  %v568_v4 = vld [vmem:[%s499_s11] sm:$0xff]  ;;  %s518_s17 = scalar_lea.vmem %s2003_s2, %s1205_s14  ;;  %v1454_v25 = vmul.f32 %v661_v23, %v1331_v0  ;;  %v1458_v26 = vmul.f32 %v1451_v24, %v1331_v0  ;;  %v1462_v27 = vmul.f32 %v1443_v20, %v1331_v0 }
  0x13   : > { %v1350_v5 = vmul.f32 0.0, %v568_v4  ;;  %v1353_v6 = vld [vmem:[%s1324_s8 + $0x20] sm:$0xff]  ;;  %v1360_v7 = vld [vmem:[%s1324_s8 + $0x30] sm:$0xff]  ;;  %v1363_v8 = vld [vmem:[%s1324_s8 + $0x28] sm:$0xff]  ;;  %v1465_v28 = vmul.f32 %v661_v23, %v1334_v1  ;;  %v1469_v29 = vmul.f32 %v1451_v24, %v1334_v1  ;;  %v1472_v30 = vmul.f32 %v661_v23, %v1341_v2 }
  0x14   : > { %v1370_v9 = vld [vmem:[%s1324_s8 + $0x40] sm:$0xff]  ;;  %v1373_v10 = vld [vmem:[%s1324_s8 + $0x38] sm:$0xff]  ;;  %v1380_v11 = vld [vmem:[%s1324_s8 + $0x50] sm:$0xff]  ;;  %v1476_v31 = vmul.f32 %v1451_v24, %v1341_v2  ;;  %v1482_v34 = vmul.f32 %v1443_v20, %v1341_v2  ;;  %v1485_v35 = vmul.f32 %v661_v23, %v1344_v3  ;;  %v1489_v36 = vmul.f32 %v1451_v24, %v1344_v3 }
  0x15   : > { %v1383_v12 = vld [vmem:[%s1324_s8 + $0x48] sm:$0xff]  ;;  %v1390_v13 = vld [vmem:[%s1324_s8 + $0x60] sm:$0xff]  ;;  %v1393_v14 = vld [vmem:[%s1324_s8 + $0x58] sm:$0xff]  ;;  %v1493_v37 = vmul.f32 %v1443_v20, %v1344_v3  ;;  %v1496_v38 = vmul.f32 %v661_v23, %v1353_v6  ;;  %v1500_v39 = vmul.f32 %v1451_v24, %v1353_v6  ;;  %v1504_v40 = vmul.f32 %v1443_v20, %v1353_v6 }
  0x16   : > { %586 = vrot.lane.b32.xlu1 %v1341_v2, %s1258_s12  ;;  %588 = vrot.lane.b32.xlu0 %v1344_v3, %s1258_s12  ;;  %v1400_v15 = vld [vmem:[%s1324_s8 + $0x70] sm:$0xff]  ;;  %v1403_v16 = vld [vmem:[%s1324_s8 + $0x68] sm:$0xff]  ;;  %v1507_v41 = vmul.f32 %v661_v23, %v1350_v5  ;;  %v1510_v42 = vmul.f32 %v661_v23, %v1360_v7  ;;  %v1514_v43 = vmul.f32 %v1451_v24, %v1360_v7 }
  0x17   : > { %v1410_v17 = vld [vmem:[%s1324_s8 + $0x78] sm:$0xff]  ;;  %v574_v18 = vld [vmem:[%s518_s17] sm:$0xff]  ;;  %v1518_v44 = vmul.f32 %v1443_v20, %v1360_v7  ;;  %v1521_v45 = vmul.f32 %v661_v23, %v1363_v8  ;;  %v1525_v48 = vmul.f32 %v1451_v24, %v1363_v8  ;;  %v1529_v49 = vmul.f32 %v1443_v20, %v1363_v8 }
  0x18   : > { %v1435_v19 = vmul.f32 0.0, %v574_v18  ;;  %v1532_v50 = vmul.f32 %v661_v23, %v1370_v9  ;;  %v1536_v51 = vmul.f32 %v1451_v24, %v1370_v9  ;;  %v1540_v52 = vmul.f32 %v1443_v20, %v1370_v9 }
  0x19   : > { %v1543_v53 = vmul.f32 %v661_v23, %v1373_v10  ;;  %v1547_v54 = vmul.f32 %v1451_v24, %v1373_v10  ;;  %v1551_v55 = vmul.f32 %v1443_v20, %v1373_v10  ;;  %v1554_v56 = vmul.f32 %v661_v23, %v1380_v11 }
  0x1a   : > { %590 = vrot.lane.b32.xlu1 %v1353_v6, %s1258_s12  ;;  %580 = vrot.lane.b32.xlu0 %v1350_v5, %s1258_s12  ;;  %v1558_v57 = vmul.f32 %v1451_v24, %v1380_v11  ;;  %v1562_v58 = vmul.f32 %v1443_v20, %v1380_v11  ;;  %v1565_v59 = vmul.f32 %v661_v23, %v1383_v12 }
  0x1b   : > { %v1574_v61 = vmul.f32 %v1451_v24, %v1383_v12  ;;  %v1578_v62 = vmul.f32 %v1443_v20, %v1383_v12  ;;  %v1581_v63 = vmul.f32 %v661_v23, %v1390_v13  ;;  %v1624_v18 = vmul.f32 %v1443_v20, %v1400_v15 }
  0x1d   : > { %2015 = vst [vmem:[#allocation8_spill] sm:$0xff] %v1624_v18 }
  0x1e   : > { %594 = vrot.lane.b32.xlu1 %v1360_v7, %s1258_s12  ;;  %592 = vrot.lane.b32.xlu0 %v1363_v8, %s1258_s12 }
  0x22   : > { %598 = vrot.lane.b32.xlu1 %v1370_v9, %s1258_s12  ;;  %596 = vrot.lane.b32.xlu0 %v1373_v10, %s1258_s12 }
  0x26   : > { %602 = vrot.lane.b32.xlu1 %v1380_v11, %s1258_s12  ;;  %600 = vrot.lane.b32.xlu0 %v1383_v12, %s1258_s12 }
  0x2a   : > { %606 = vrot.lane.b32.xlu1 %v1390_v13, %s1258_s12  ;;  %604 = vrot.lane.b32.xlu0 %v1393_v14, %s1258_s12 }
  0x2e   : > { %610 = vrot.lane.b32.xlu1 %v1400_v15, %s1258_s12  ;;  %608 = vrot.lane.b32.xlu0 %v1403_v16, %s1258_s12 }
  0x32   : > { %612 = vrot.lane.b32.xlu1 %v1350_v5, %s1259_s13  ;;  %727 = vrot.lane.b32.xlu0 %v1410_v17, %s1258_s12  ;;  %v1599_v5 = vmul.f32 %v1443_v20, %v1390_v13 }
  0x34   : > { %2009 = vst [vmem:[#allocation2_spill] sm:$0xff] %v1599_v5 }
  0x36   : > { %616 = vrot.lane.b32.xlu1 %v1331_v0, %s1259_s13  ;;  %614 = vrot.lane.b32.xlu0 %v1334_v1, %s1259_s13  ;;  %v1585_v0 = vmul.f32 %v1451_v24, %v1390_v13  ;;  %v1590_v1 = vld [vmem:[%s2004_s3] sm:$0xff] }
  0x3a   : > { %620 = vrot.lane.b32.xlu1 %v1344_v3, %s1259_s13  ;;  %618 = vrot.lane.b32.xlu0 %v1341_v2, %s1259_s13  ;;  %v1595_v2 = vld [vmem:[%s2004_s3 + $0x8] sm:$0xff] }
  0x3e   : > { %624 = vrot.lane.b32.xlu1 %v1363_v8, %s1259_s13  ;;  %622 = vrot.lane.b32.xlu0 %v1353_v6, %s1259_s13  ;;  %v1602_v6 = vmul.f32 %v661_v23, %v1393_v14  ;;  %v1610_v8 = vmul.f32 %v1443_v20, %v1393_v14 }
  0x40   : > { %2010 = vst [vmem:[#allocation3_spill] sm:$0xff] %v1602_v6  ;;  %2012 = vst [vmem:[#allocation5_spill] sm:$0xff] %v1610_v8  ;;  %v1631_v8 = vmul.f32 %v1451_v24, %v1403_v16 }
  0x42   : > { %628 = vrot.lane.b32.xlu1 %v1373_v10, %s1259_s13  ;;  %626 = vrot.lane.b32.xlu0 %v1360_v7, %s1259_s13  ;;  %v1606_v7 = vmul.f32 %v1451_v24, %v1393_v14  ;;  %2017 = vst [vmem:[#allocation10_spill] sm:$0xff] %v1631_v8  ;;  %v1648_v8 = vmul.f32 %v1443_v20, %v1410_v17 }
  0x44   : > { %2011 = vst [vmem:[#allocation4_spill] sm:$0xff] %v1606_v7 }
  0x46   : > { %632 = vrot.lane.b32.xlu1 %v1383_v12, %s1259_s13  ;;  %630 = vrot.lane.b32.xlu0 %v1370_v9, %s1259_s13  ;;  %v1619_v12 = vmul.f32 %v1451_v24, %v1400_v15 }
  0x48   : > { %2014 = vst [vmem:[#allocation7_spill] sm:$0xff] %v1619_v12 }
  0x4a   : > { %636 = vrot.lane.b32.xlu1 %v1393_v14, %s1259_s13  ;;  %634 = vrot.lane.b32.xlu0 %v1380_v11, %s1259_s13  ;;  %v1615_v11 = vmul.f32 %v661_v23, %v1400_v15  ;;  %v1627_v14 = vmul.f32 %v661_v23, %v1403_v16  ;;  %v1640_v23 = vmul.f32 %v1443_v20, %v1403_v16 }
  0x4c   : > { %2013 = vst [vmem:[#allocation6_spill] sm:$0xff] %v1615_v11  ;;  %2016 = vst [vmem:[#allocation9_spill] sm:$0xff] %v1627_v14  ;;  %v1644_v14 = vmul.f32 %v1451_v24, %v1410_v17 }
  0x4e   : > { %640 = vrot.lane.b32.xlu1 %v1403_v16, %s1259_s13  ;;  %638 = vrot.lane.b32.xlu0 %v1390_v13, %s1259_s13  ;;  %v1660_v16 = vmul.f32 %v1443_v20, %v1435_v19 }
  0x50   : > { %2018 = vst [vmem:[#allocation11_spill] sm:$0xff] %v1660_v16 }
  0x52   : > { %729 = vrot.lane.b32.xlu1 %v1410_v17, %s1259_s13  ;;  %642 = vrot.lane.b32.xlu0 %v1400_v15, %s1259_s13 }
  0x56   : > { %833 = vrot.lane.b32.xlu0 %v1435_v19, %s1258_s12  ;;  %835 = vrot.lane.b32.xlu1 %v1435_v19, %s1259_s13 }
  0x84   : > { %v585_v21 = vpop.permute.xlu1 %584  ;;  %v583_v22 = vpop.permute.xlu0 %582 }
  0x85   : > { %v647_v9 = vmul.f32 %v1590_v1, %v585_v21  ;;  %v734_v10 = vmul.f32 %v1595_v2, %v585_v21  ;;  %v839_v13 = vmul.f32 %v1570_v60, %v585_v21  ;;  %v646_v7 = vmul.f32 %v1590_v1, %v583_v22 }
  0x86   : > { %v733_v11 = vmul.f32 %v1595_v2, %v583_v22 }
  0x87   : > { %v1651_v22 = vadd.f32 %v1454_v25, %v647_v9  ;;  %v1654_v18 = vadd.f32 %v1458_v26, %v734_v10  ;;  %v1663_v24 = vadd.f32 %v1462_v27, %v839_v13  ;;  %v1671_v26 = vadd.f32 %v1465_v28, %v646_v7 }
  0x88   : > { %v587_v32 = vpop.permute.xlu1 %586  ;;  %v1478_v33 = vpop.permute.xlu0 %588  ;;  %v1674_v10 = vadd.f32 %v1469_v29, %v733_v11 }
  0x89   : > { %v648_v6 = vmul.f32 %v1590_v1, %v587_v32  ;;  %v735_v12 = vmul.f32 %v1595_v2, %v587_v32  ;;  %v840_v21 = vmul.f32 %v1570_v60, %v587_v32  ;;  %v649_v32 = vmul.f32 %v1590_v1, %v1478_v33 }
  0x8a   : > { %v736_v17 = vmul.f32 %v1595_v2, %v1478_v33  ;;  %v841_v25 = vmul.f32 %v1570_v60, %v1478_v33 }
  0x8b   : > { %v1677_v19 = vadd.f32 %v1472_v30, %v648_v6  ;;  %v1680_v20 = vadd.f32 %v1476_v31, %v735_v12  ;;  %v1683_v27 = vadd.f32 %v1482_v34, %v840_v21  ;;  %v1689_v29 = vadd.f32 %v1485_v35, %v649_v32 }
  0x8c   : > { %v591_v46 = vpop.permute.xlu1 %590  ;;  %v581_v47 = vpop.permute.xlu0 %580  ;;  %v1695_v34 = vadd.f32 %v1489_v36, %v736_v17  ;;  %v1698_v11 = vadd.f32 %v1493_v37, %v841_v25 }
  0x8d   : > { %v650_v9 = vmul.f32 %v1590_v1, %v591_v46  ;;  %v737_v13 = vmul.f32 %v1595_v2, %v591_v46  ;;  %v842_v33 = vmul.f32 %v1570_v60, %v591_v46  ;;  %v645_v16 = vmul.f32 %v1590_v1, %v581_v47 }
  0x8f   : > { %v1701_v46 = vadd.f32 %v1496_v38, %v650_v9  ;;  %v1712_v36 = vadd.f32 %v1504_v40, %v842_v33  ;;  %v1715_v37 = vadd.f32 %v1507_v41, %v645_v16 }
  0x90   : > { %v595_v3 = vpop.permute.xlu1 %594  ;;  %v593_v4 = vpop.permute.xlu0 %592 }
  0x91   : > { %v652_v30 = vmul.f32 %v1590_v1, %v595_v3  ;;  %v739_v6 = vmul.f32 %v1595_v2, %v595_v3  ;;  %v844_v31 = vmul.f32 %v1570_v60, %v595_v3  ;;  %2019 = vst [vmem:[#allocation12_spill] sm:$0xff] %v1701_v46  ;;  %v651_v47 = vmul.f32 %v1590_v1, %v593_v4 }
  0x92   : > { %v738_v35 = vmul.f32 %v1595_v2, %v593_v4  ;;  %v843_v12 = vmul.f32 %v1570_v60, %v593_v4  ;;  %v1709_v3 = vadd.f32 %v1500_v39, %v737_v13 }
  0x93   : > { %v1719_v9 = vadd.f32 %v1510_v42, %v652_v30  ;;  %v1722_v4 = vadd.f32 %v1514_v43, %v739_v6  ;;  %v1725_v46 = vadd.f32 %v1518_v44, %v844_v31  ;;  %v1729_v40 = vadd.f32 %v1521_v45, %v651_v47 }
  0x94   : > { %v599_v5 = vpop.permute.xlu1 %598  ;;  %v597_v15 = vpop.permute.xlu0 %596  ;;  %v1735_v42 = vadd.f32 %v1525_v48, %v738_v35  ;;  %v1738_v43 = vadd.f32 %v1529_v49, %v843_v12 }
  0x95   : > { %v654_v21 = vmul.f32 %v1590_v1, %v599_v5  ;;  %v741_v32 = vmul.f32 %v1595_v2, %v599_v5  ;;  %v846_v38 = vmul.f32 %v1570_v60, %v599_v5  ;;  %v653_v39 = vmul.f32 %v1590_v1, %v597_v15 }
  0x96   : > { %v740_v41 = vmul.f32 %v1595_v2, %v597_v15  ;;  %v845_v5 = vmul.f32 %v1570_v60, %v597_v15 }
  0x97   : > { %v1741_v44 = vadd.f32 %v1532_v50, %v654_v21  ;;  %v1744_v13 = vadd.f32 %v1536_v51, %v741_v32  ;;  %v1747_v45 = vadd.f32 %v1540_v52, %v846_v38  ;;  %v1753_v49 = vadd.f32 %v1543_v53, %v653_v39 }
  0x98   : > { %v603_v28 = vpop.permute.xlu1 %602  ;;  %v601_v7 = vpop.permute.xlu0 %600  ;;  %v1759_v52 = vadd.f32 %v1547_v54, %v740_v41  ;;  %v1762_v47 = vadd.f32 %v1551_v55, %v845_v5 }
  0x99   : > { %v656_v16 = vmul.f32 %v1590_v1, %v603_v28  ;;  %v743_v33 = vmul.f32 %v1595_v2, %v603_v28  ;;  %v848_v15 = vmul.f32 %v1570_v60, %v603_v28  ;;  %v655_v30 = vmul.f32 %v1590_v1, %v601_v7 }
  0x9a   : > { %v742_v50 = vmul.f32 %v1595_v2, %v601_v7  ;;  %v847_v31 = vmul.f32 %v1570_v60, %v601_v7 }
  0x9b   : > { %v1765_v28 = vadd.f32 %v1554_v56, %v656_v16  ;;  %v1773_v32 = vadd.f32 %v1558_v57, %v743_v33  ;;  %v1776_v54 = vadd.f32 %v1562_v58, %v848_v15  ;;  %v1779_v55 = vadd.f32 %v1565_v59, %v655_v30  ;;  %v1795_v58 = vld [vmem:[%s2006_s5] sm:$0xff]  ;;  %v1811_v16 = vld [vmem:[%s2006_s5 + $0x10] sm:$0xff] }
  0x9c   : > { %v607_v17 = vpop.permute.xlu1 %606  ;;  %v605_v25 = vpop.permute.xlu0 %604  ;;  %v1786_v41 = vadd.f32 %v1578_v62, %v847_v31  ;;  %v2024_v33 = vld [vmem:[#allocation2_spill] sm:$0xff] }
  0x9d   : > { %v658_v51 = vmul.f32 %v1590_v1, %v607_v17  ;;  %v745_v35 = vmul.f32 %v1595_v2, %v607_v17  ;;  %v850_v53 = vmul.f32 %v1570_v60, %v607_v17  ;;  %v657_v12 = vmul.f32 %v1590_v1, %v605_v25  ;;  %2020 = vst [vmem:[#allocation13_spill] sm:$0xff] %v1773_v32 }
  0x9e   : > { %v744_v21 = vmul.f32 %v1595_v2, %v605_v25  ;;  %v849_v7 = vmul.f32 %v1570_v60, %v605_v25  ;;  %2021 = vst [vmem:[#allocation14_spill] sm:$0xff] %v1776_v54  ;;  %v1783_v17 = vadd.f32 %v1574_v61, %v742_v50  ;;  %v2028_v50 = vld [vmem:[#allocation5_spill] sm:$0xff] }
  0x9f   : > { %v1789_v25 = vadd.f32 %v1581_v63, %v658_v51  ;;  %v1798_v59 = vadd.f32 %v1585_v0, %v745_v35  ;;  %v1806_v63 = vld [vmem:[%s2006_s5 + $0x8] sm:$0xff]  ;;  %v1814_v15 = vadd.f32 %v2024_v33, %v850_v53  ;;  %v2029_v51 = vld [vmem:[#allocation6_spill] sm:$0xff] }
  0xa0   : > { %v611_v48 = vpop.permute.xlu1 %610  ;;  %v609_v6 = vpop.permute.xlu0 %608  ;;  %v2026_v0 = vld [vmem:[#allocation3_spill] sm:$0xff]  ;;  %v1823_v31 = vadd.f32 %v2028_v50, %v849_v7  ;;  %v2034_v50 = vld [vmem:[#allocation9_spill] sm:$0xff] }
  0xa1   : > { %v660_v56 = vmul.f32 %v1590_v1, %v611_v48  ;;  %2022 = vst [vmem:[#allocation15_spill] sm:$0xff] %v1789_v25  ;;  %v747_v57 = vmul.f32 %v1595_v2, %v611_v48  ;;  %2023 = vst [vmem:[#allocation16_spill] sm:$0xff] %v1798_v59  ;;  %v852_v5 = vmul.f32 %v1570_v60, %v611_v48  ;;  %v2027_v48 = vld [vmem:[#allocation4_spill] sm:$0xff] }
  0xa2   : > { %v659_v61 = vmul.f32 %v1590_v1, %v609_v6  ;;  %v746_v62 = vmul.f32 %v1595_v2, %v609_v6  ;;  %2025 = vst [vmem:[#allocation2_spill] sm:$0xff] %v1814_v15  ;;  %v1817_v30 = vadd.f32 %v2026_v0, %v657_v12  ;;  %v1820_v1 = vadd.f32 %v2027_v48, %v744_v21  ;;  %v2031_v15 = vld [vmem:[#allocation7_spill] sm:$0xff]  ;;  %v2033_v48 = vld [vmem:[#allocation8_spill] sm:$0xff] }
  0xa3   : > { %v1826_v35 = vadd.f32 %v2029_v51, %v660_v56  ;;  %v851_v59 = vmul.f32 %v1570_v60, %v609_v6  ;;  %v1832_v12 = vadd.f32 %v2031_v15, %v747_v57  ;;  %v1838_v56 = vadd.f32 %v2033_v48, %v852_v5 }
  0xa4   : > { %v613_v38 = vpop.permute.xlu1 %612  ;;  %v728_v39 = vpop.permute.xlu0 %727  ;;  %v1841_v6 = vadd.f32 %v2034_v50, %v659_v61 }
  0xa5   : > { %2030 = vst [vmem:[#allocation3_spill] sm:$0xff] %v1826_v35  ;;  %v695_v25 = vmul.f32 %v1795_v58, %v613_v38  ;;  %v748_v54 = vmul.f32 %v1595_v2, %v728_v39  ;;  %2032 = vst [vmem:[#allocation4_spill] sm:$0xff] %v1832_v12  ;;  %v2035_v38 = vld [vmem:[#allocation10_spill] sm:$0xff]  ;;  %v853_v57 = vmul.f32 %v1570_v60, %v728_v39 }
  0xa6   : > { %v1844_v51 = vadd.f32 %v2035_v38, %v746_v62  ;;  %v1852_v32 = vadd.f32 %v1640_v23, %v851_v59 }
  0xa7   : > { %v711_v5 = vadd.f32 %v695_v25, %v1715_v37  ;;  %v1856_v61 = vadd.f32 %v1644_v14, %v748_v54  ;;  %v1866_v54 = vadd.f32 %v1648_v8, %v853_v57 }
  0xa8   : > { %v617_v53 = vpop.permute.xlu1 %616  ;;  %v615_v33 = vpop.permute.xlu0 %614 }
  0xa9   : > { %v786_v21 = vmul.f32 %v1806_v63, %v617_v53  ;;  %v891_v0 = vmul.f32 %v1811_v16, %v617_v53  ;;  %v696_v7 = vmul.f32 %v1795_v58, %v615_v33  ;;  %v785_v2 = vmul.f32 %v1806_v63, %v615_v33 }
  0xaa   : > { %v697_v15 = vmul.f32 %v1795_v58, %v617_v53 }
  0xab   : > { %v802_v12 = vadd.f32 %v786_v21, %v1654_v18  ;;  %v712_v35 = vadd.f32 %v696_v7, %v1671_v26  ;;  %v801_v62 = vadd.f32 %v785_v2, %v1674_v10  ;;  %v907_v39 = vadd.f32 %v891_v0, %v1663_v24  ;;  %v1872_v24 = vld [vmem:[%s2007_s6] sm:$0xff] }
  0xac   : > { %v621_v48 = vpop.permute.xlu1 %620  ;;  %v619_v33 = vpop.permute.xlu0 %618  ;;  %v713_v10 = vadd.f32 %v697_v15, %v1651_v22 }
  0xad   : > { %v818_v50 = vadd.f32 %v802_v12, %v712_v35  ;;  %v788_v53 = vmul.f32 %v1806_v63, %v621_v48  ;;  %v893_v18 = vmul.f32 %v1811_v16, %v621_v48  ;;  %v817_v26 = vadd.f32 %v801_v62, %v711_v5 }
  0xae   : > { %v698_v23 = vmul.f32 %v1795_v58, %v619_v33  ;;  %v787_v37 = vmul.f32 %v1806_v63, %v619_v33  ;;  %v892_v14 = vmul.f32 %v1811_v16, %v619_v33  ;;  %v699_v25 = vmul.f32 %v1795_v58, %v621_v48  ;;  %v2036_v48 = vld [vmem:[#allocation12_spill] sm:$0xff] }
  0xaf   : > { %v804_v59 = vadd.f32 %v788_v53, %v1695_v34  ;;  %v923_v35 = vadd.f32 %v907_v39, %v817_v26  ;;  %v909_v22 = vadd.f32 %v893_v18, %v1698_v11 }
  0xb0   : > { %v714_v12 = vadd.f32 %v698_v23, %v1677_v19  ;;  %v803_v21 = vadd.f32 %v787_v37, %v1680_v20  ;;  %v908_v0 = vadd.f32 %v892_v14, %v1683_v27  ;;  %v625_v8 = vpop.permute.xlu1 %624  ;;  %v623_v7 = vpop.permute.xlu0 %622  ;;  %v715_v15 = vadd.f32 %v699_v25, %v1689_v29 }
  0xb1   : > { %v701_v38 = vmul.f32 %v1795_v58, %v625_v8  ;;  %v790_v34 = vmul.f32 %v1806_v63, %v625_v8  ;;  %v700_v19 = vmul.f32 %v1795_v58, %v623_v7  ;;  %v940_v20 = vadd.f32 %v1872_v24, %v923_v35 }
  0xb2   : > { %v819_v2 = vadd.f32 %v803_v21, %v713_v10  ;;  %v820_v27 = vadd.f32 %v804_v59, %v714_v12  ;;  %v924_v57 = vadd.f32 %v908_v0, %v818_v50  ;;  %v895_v62 = vmul.f32 %v1811_v16, %v625_v8 }
  0xb3   : > { %v806_v5 = vadd.f32 %v790_v34, %v1735_v42  ;;  %v716_v11 = vadd.f32 %v700_v19, %v2036_v48  ;;  %956 = vst [vmem:[%s1883_s21] sm:$0xff] %v940_v20  ;;  %v789_v53 = vmul.f32 %v1806_v63, %v623_v7  ;;  %v894_v18 = vmul.f32 %v1811_v16, %v623_v7 }
  0xb4   : > { %v925_v33 = vadd.f32 %v909_v22, %v819_v2  ;;  %v941_v39 = vadd.f32 %v1872_v24, %v924_v57  ;;  %v629_v26 = vpop.permute.xlu1 %628  ;;  %v627_v50 = vpop.permute.xlu0 %626  ;;  %v717_v29 = vadd.f32 %v701_v38, %v1729_v40  ;;  %v911_v35 = vadd.f32 %v895_v62, %v1738_v43 }
  0xb5   : > { %v822_v23 = vadd.f32 %v806_v5, %v716_v11  ;;  %v703_v42 = vmul.f32 %v1795_v58, %v629_v26  ;;  %v792_v37 = vmul.f32 %v1806_v63, %v629_v26  ;;  %v805_v10 = vadd.f32 %v789_v53, %v1709_v3 }
  0xb6   : > { %v942_v14 = vadd.f32 %v1872_v24, %v925_v33  ;;  %957 = vst [vmem:[%s1883_s21 + $0x8] sm:$0xff] %v941_v39  ;;  %v910_v25 = vadd.f32 %v894_v18, %v1712_v36  ;;  %v702_v59 = vmul.f32 %v1795_v58, %v627_v50  ;;  %v897_v40 = vmul.f32 %v1811_v16, %v629_v26 }
  0xb7   : > { %v808_v12 = vadd.f32 %v792_v37, %v1759_v52  ;;  %v791_v21 = vmul.f32 %v1806_v63, %v627_v50  ;;  %v821_v0 = vadd.f32 %v805_v10, %v715_v15  ;;  %v896_v22 = vmul.f32 %v1811_v16, %v627_v50 }
  0xb8   : > { %958 = vst [vmem:[%s1883_s21 + $0x10] sm:$0xff] %v942_v14  ;;  %v926_v8 = vadd.f32 %v910_v25, %v820_v27  ;;  %v718_v7 = vadd.f32 %v702_v59, %v1719_v9  ;;  %v633_v3 = vpop.permute.xlu1 %632  ;;  %v631_v36 = vpop.permute.xlu0 %630  ;;  %v719_v38 = vadd.f32 %v703_v42, %v1753_v49  ;;  %v913_v9 = vadd.f32 %v897_v40, %v1762_v47 }
  0xb9   : > { %v807_v43 = vadd.f32 %v791_v21, %v1722_v4  ;;  %v705_v52 = vmul.f32 %v1795_v58, %v633_v3  ;;  %v794_v34 = vmul.f32 %v1806_v63, %v633_v3  ;;  %v927_v19 = vadd.f32 %v911_v35, %v821_v0 }
  0xba   : > { %v943_v20 = vadd.f32 %v1872_v24, %v926_v8  ;;  %v824_v2 = vadd.f32 %v808_v12, %v718_v7  ;;  %v912_v27 = vadd.f32 %v896_v22, %v1725_v46  ;;  %v899_v49 = vmul.f32 %v1811_v16, %v633_v3  ;;  %v2037_v7 = vld [vmem:[#allocation13_spill] sm:$0xff] }
  0xbb   : > { %v823_v57 = vadd.f32 %v807_v43, %v717_v29  ;;  %v810_v15 = vadd.f32 %v794_v34, %v1783_v17  ;;  %v944_v4 = vadd.f32 %v1872_v24, %v927_v19  ;;  %v704_v62 = vmul.f32 %v1795_v58, %v631_v36 }
  0xbc   : > { %959 = vst [vmem:[%s1883_s21 + $0x18] sm:$0xff] %v943_v20  ;;  %v928_v5 = vadd.f32 %v912_v27, %v822_v23  ;;  %v793_v48 = vmul.f32 %v1806_v63, %v631_v36  ;;  %v637_v11 = vpop.permute.xlu1 %636  ;;  %v635_v33 = vpop.permute.xlu0 %634  ;;  %v898_v39 = vmul.f32 %v1811_v16, %v631_v36  ;;  %v721_v18 = vadd.f32 %v705_v52, %v1779_v55 }
  0xbd   : > { %v929_v46 = vadd.f32 %v913_v9, %v823_v57  ;;  %v707_v47 = vmul.f32 %v1795_v58, %v637_v11  ;;  %v796_v17 = vmul.f32 %v1806_v63, %v637_v11  ;;  %960 = vst [vmem:[%s1883_s21 + $0x20] sm:$0xff] %v944_v4  ;;  %v720_v26 = vadd.f32 %v704_v62, %v1741_v44  ;;  %v2039_v4 = vld [vmem:[#allocation15_spill] sm:$0xff]  ;;  %v2040_v62 = vld [vmem:[#allocation16_spill] sm:$0xff] }
  0xbe   : > { %v945_v53 = vadd.f32 %v1872_v24, %v928_v5  ;;  %v809_v50 = vadd.f32 %v793_v48, %v1744_v13  ;;  %v915_v23 = vadd.f32 %v899_v49, %v1786_v41  ;;  %v914_v42 = vadd.f32 %v898_v39, %v1747_v45  ;;  %v2042_v39 = vld [vmem:[#allocation3_spill] sm:$0xff] }
  0xbf   : > { %v946_v29 = vadd.f32 %v1872_v24, %v929_v46  ;;  %v901_v37 = vmul.f32 %v1811_v16, %v637_v11  ;;  %v826_v10 = vadd.f32 %v810_v15, %v720_v26  ;;  %v812_v25 = vadd.f32 %v796_v17, %v1820_v1  ;;  %v2041_v11 = vld [vmem:[#allocation2_spill] sm:$0xff] }
  0xc0   : > { %961 = vst [vmem:[%s1883_s21 + $0x28] sm:$0xff] %v945_v53  ;;  %v825_v14 = vadd.f32 %v809_v50, %v719_v38  ;;  %v706_v59 = vmul.f32 %v1795_v58, %v635_v33  ;;  %v641_v55 = vpop.permute.xlu1 %640  ;;  %v639_v35 = vpop.permute.xlu0 %638  ;;  %v930_v44 = vadd.f32 %v914_v42, %v824_v2  ;;  %v723_v13 = vadd.f32 %v707_v47, %v1817_v30  ;;  %v2038_v30 = vld [vmem:[#allocation14_spill] sm:$0xff] }
  0xc1   : > { %962 = vst [vmem:[%s1883_s21 + $0x30] sm:$0xff] %v946_v29  ;;  %v795_v12 = vmul.f32 %v1806_v63, %v635_v33  ;;  %v900_v45 = vmul.f32 %v1811_v16, %v635_v33  ;;  %v798_v21 = vmul.f32 %v1806_v63, %v641_v55  ;;  %v903_v1 = vmul.f32 %v1811_v16, %v641_v55 }
  0xc2   : > { %v931_v41 = vadd.f32 %v915_v23, %v825_v14  ;;  %v722_v40 = vadd.f32 %v706_v59, %v1765_v28  ;;  %v947_v0 = vadd.f32 %v1872_v24, %v930_v44  ;;  %v917_v8 = vadd.f32 %v901_v37, %v1823_v31 }
  0xc3   : > { %v811_v22 = vadd.f32 %v795_v12, %v2037_v7  ;;  %v916_v3 = vadd.f32 %v900_v45, %v2038_v30  ;;  %v709_v43 = vmul.f32 %v1795_v58, %v641_v55  ;;  %v814_v28 = vadd.f32 %v798_v21, %v1844_v51 }
  0xc4   : > { %v948_v36 = vadd.f32 %v1872_v24, %v931_v41  ;;  %v828_v38 = vadd.f32 %v812_v25, %v722_v40  ;;  %v730_v52 = vpop.permute.xlu1 %729  ;;  %v643_v34 = vpop.permute.xlu0 %642  ;;  %963 = vst [vmem:[%s1883_s21 + $0x38] sm:$0xff] %v947_v0  ;;  %v708_v2 = vmul.f32 %v1795_v58, %v639_v35  ;;  %v797_v31 = vmul.f32 %v1806_v63, %v639_v35 }
  0xc5   : > { %v827_v19 = vadd.f32 %v811_v22, %v721_v18  ;;  %v932_v20 = vadd.f32 %v916_v3, %v826_v10  ;;  %v919_v27 = vadd.f32 %v903_v1, %v1852_v32  ;;  %v902_v9 = vmul.f32 %v1811_v16, %v639_v35  ;;  %v2043_v10 = vld [vmem:[#allocation4_spill] sm:$0xff]  ;;  %v2044_v35 = vld [vmem:[#allocation11_spill] sm:$0xff] }
  0xc6   : > { %964 = vst [vmem:[%s1883_s21 + $0x40] sm:$0xff] %v948_v36  ;;  %v800_v57 = vmul.f32 %v1806_v63, %v730_v52  ;;  %v710_v15 = vmul.f32 %v1795_v58, %v643_v34  ;;  %v724_v5 = vadd.f32 %v708_v2, %v2039_v4  ;;  %v813_v48 = vadd.f32 %v797_v31, %v2040_v62 }
  0xc7   : > { %v933_v51 = vadd.f32 %v917_v8, %v827_v19  ;;  %v949_v49 = vadd.f32 %v1872_v24, %v932_v20  ;;  %v918_v33 = vadd.f32 %v902_v9, %v2041_v11  ;;  %v905_v32 = vmul.f32 %v1811_v16, %v730_v52 }
  0xc8   : > { %v816_v46 = vadd.f32 %v800_v57, %v1856_v61  ;;  %v726_v47 = vadd.f32 %v710_v15, %v2042_v39  ;;  %v834_v17 = vpop.permute.xlu0 %833  ;;  %v836_v53 = vpop.permute.xlu1 %835  ;;  %v829_v18 = vadd.f32 %v813_v48, %v723_v13  ;;  %v830_v26 = vadd.f32 %v814_v28, %v724_v5 }
  0xc9   : > { %v950_v58 = vadd.f32 %v1872_v24, %v933_v51  ;;  %965 = vst [vmem:[%s1883_s21 + $0x48] sm:$0xff] %v949_v49  ;;  %v799_v50 = vmul.f32 %v1806_v63, %v643_v34  ;;  %v934_v29 = vadd.f32 %v918_v33, %v828_v38  ;;  %v904_v23 = vmul.f32 %v1811_v16, %v643_v34 }
  0xca   : > { %v854_v42 = vmul.f32 %v1570_v60, %v834_v17  ;;  %v832_v61 = vadd.f32 %v816_v46, %v726_v47  ;;  %v725_v37 = vadd.f32 %v709_v43, %v1841_v6  ;;  %v935_v14 = vadd.f32 %v919_v27, %v829_v18 }
  0xcb   : > { %966 = vst [vmem:[%s1883_s21 + $0x50] sm:$0xff] %v950_v58  ;;  %v815_v25 = vadd.f32 %v799_v50, %v2043_v10  ;;  %v906_v59 = vmul.f32 %v1811_v16, %v836_v53  ;;  %v951_v55 = vadd.f32 %v1872_v24, %v934_v29  ;;  %v920_v63 = vadd.f32 %v904_v23, %v1838_v56 }
  0xcc   : > { %v888_v44 = vadd.f32 %v2044_v35, %v854_v42  ;;  %v952_v60 = vadd.f32 %v1872_v24, %v935_v14  ;;  %v921_v13 = vadd.f32 %v905_v32, %v1866_v54 }
  0xcd   : > { %v831_v12 = vadd.f32 %v815_v25, %v725_v37  ;;  %967 = vst [vmem:[%s1883_s21 + $0x58] sm:$0xff] %v951_v55  ;;  %v936_v6 = vadd.f32 %v920_v63, %v830_v26 }
  0xce   : > { %v922_v45 = vadd.f32 %v906_v59, %v888_v44  ;;  %968 = vst [vmem:[%s1883_s21 + $0x60] sm:$0xff] %v952_v60 }
  0xcf   : > { %v937_v41 = vadd.f32 %v921_v13, %v831_v12  ;;  %v953_v16 = vadd.f32 %v1872_v24, %v936_v6 }
  0xd0   : > { %v938_v40 = vadd.f32 %v922_v45, %v832_v61 }
  0xd1   : > { %v954_v21 = vadd.f32 %v1872_v24, %v937_v41  ;;  %969 = vst [vmem:[%s1883_s21 + $0x68] sm:$0xff] %v953_v16 }
  0xd2   : > { %v955_v56 = vadd.f32 %v1872_v24, %v938_v40 }
  0xd3   : > { %970 = vst [vmem:[%s1883_s21 + $0x70] sm:$0xff] %v954_v21 }
  0xd4   : > { %971 = vst [vmem:[%s1883_s21 + $0x78] sm:$0xff] %v955_v56 }
  0xd5 PF: > { %s17_s26 = sadd.s32 1, %s1256_s26   ;;  %s2045_s24 = smov %s1252_s25 }
  0xd6   : > { %p14_p5 = scmp.ge.s32.totalorder %s17_s26, 4   ;;  %s2046_s25 = smov %s2048_s27 }
  0xd8   :  { %16 = sbr.rel (!%p14_p5) target bundleno = 2 (0x2), region = 102 }

</bundles_post_ra>
